<compile_context>
chip_gen: v5e
topology: v5e:2x2
jax: 0.10.0
libtpu: 0.0.40
codegen_flags: <defaults>
</compile_context>

<pallas_src>
import jax
import jax.numpy as jnp
from jax import lax
from jax.experimental import pallas as pl
from jax.experimental.pallas import tpu as pltpu

EPS = 1e-5


def _round_up(x, m):
    return ((x + m - 1) // m) * m


def _device_kind():
    try:
        return jax.devices()[0].device_kind.lower()
    except Exception:
        return ""


def _vmem_limit_bytes():
    """Scoped-VMEM limit with headroom (v7x: 64 MiB physical -> ~56 MiB)."""
    try:
        cap = int(pltpu.get_tpu_info().vmem_capacity_bytes)
    except Exception:
        cap = (64 << 20) if "v7" in _device_kind() else (128 << 20)
    return max(32 << 20, min(cap - (8 << 20), 112 << 20))


# ---------------- fused LayerNorm + Linear: W fully resident in VMEM ---------
def _prenorm_linear_full_kernel(x_ref, g_ref, b_ref, w_ref, bias_ref, o_ref):
    x = x_ref[...].astype(jnp.float32)                           # (tm, D)
    mean = jnp.mean(x, axis=-1, keepdims=True)
    var = jnp.mean((x - mean) ** 2, axis=-1, keepdims=True)      # biased (PyTorch LN)
    inv = lax.rsqrt(var + EPS)
    ln = ((x - mean) * inv * g_ref[...] + b_ref[...]).astype(w_ref.dtype)
    acc = jnp.dot(ln, w_ref[...], preferred_element_type=jnp.float32)   # (tm, Hp)
    o_ref[...] = (acc + bias_ref[...]).astype(o_ref.dtype)


# ---------------- fused LayerNorm + Linear: H-tiled weights ------------------
def _prenorm_linear_tiled_kernel(x_ref, g_ref, b_ref, w_ref, bias_ref, o_ref,
                                 ln_ref):
    # LN computed once per row tile (first H tile), stored in the MXU compute
    # dtype so the scratch is half the size and needs no per-H-tile cast.
    # NOTE: correct only while the H axis is the innermost, sequentially
    # iterated ("arbitrary") grid axis.
    @pl.when(pl.program_id(1) == 0)
    def _():
        x = x_ref[...].astype(jnp.float32)
        mean = jnp.mean(x, axis=-1, keepdims=True)
        var = jnp.mean((x - mean) ** 2, axis=-1, keepdims=True)
        inv = lax.rsqrt(var + EPS)
        ln_ref[...] = ((x - mean) * inv * g_ref[...] + b_ref[...]).astype(ln_ref.dtype)

    acc = jnp.dot(ln_ref[...], w_ref[...], preferred_element_type=jnp.float32)
    o_ref[...] = (acc + bias_ref[...]).astype(o_ref.dtype)


def pre_norm_linear(x, gamma, beta, w, bias, *, compute_dtype=jnp.bfloat16):
    """Fused PreNorm with fn = Linear:  Linear(LayerNorm(x)).

    MXU operands (LN result + weights) are cast to `compute_dtype`
    (default bf16); LayerNorm statistics and the matmul accumulator stay f32.
    Pass compute_dtype=jnp.float32 for a strict-f32 (slower) matmul.
    """
    *lead, D = x.shape
    H = w.shape[1]
    x2d = x.reshape(-1, D)
    R = x2d.shape[0]
    out_dtype = x.dtype

    if compute_dtype is None:
        compute_dtype = w.dtype
    w_c = w.astype(compute_dtype)

    # Lane-dense output: pad hidden dim (weights/bias only) up to a multiple
    # of 128.  Activations are never padded -> no extra HBM pass over x/out rows.
    Hp = _round_up(H, 128)
    bias_p = bias
    if Hp != H:
        w_c = jnp.pad(w_c, ((0, 0), (0, Hp - H)))
        bias_p = jnp.pad(bias, (0, Hp - H))

    gamma2d = gamma.reshape(1, D).astype(jnp.float32)
    beta2d = beta.reshape(1, D).astype(jnp.float32)
    bias2d = bias_p.reshape(1, Hp).astype(jnp.float32)

    x_bytes = x2d.dtype.itemsize
    w_bytes = jnp.dtype(compute_dtype).itemsize
    o_bytes = jnp.dtype(out_dtype).itemsize
    vmem_limit = _vmem_limit_bytes()

    # If W fits comfortably in VMEM, keep it fully resident: drops the H grid
    # axis, the LN scratch, and all per-row-tile W re-streaming.
    use_full_w = 2 * D * Hp * w_bytes <= (8 << 20)

    if use_full_w:
        tn = Hp
    else:
        kind = _device_kind()
        if "v5" in kind:            # lower HBM BW: narrower tn, spend VMEM on tm
            tn_pref = (256, 128, 512)
        elif "v7" in kind:          # 64 MiB VMEM
            tn_pref = (256, 512, 128)
        else:                       # v6e / default: go wide
            tn_pref = (512, 256, 128)
        tn = next(c for c in tn_pref if Hp % c == 0)

    def _fits(tm):
        est = (2 * tm * D * x_bytes                        # x tile (double buffered)
               + 2 * D * tn * w_bytes                      # W tile
               + 2 * tm * tn * o_bytes                     # out tile
               + (0 if use_full_w else tm * D * w_bytes)   # LN scratch
               + 8 * D * 4 + 4 * tn * 4)                   # gamma/beta/bias
        return est <= int(vmem_limit * 0.85)

    tm = 8
    for cand in (1024, 512, 256, 128, 64, 32, 16, 8):
        if cand <= _round_up(R, 8) and _fits(cand):
            tm = cand
            break
    if R <= 8:
        tm = R                                  # single exact block, tiny input
    elif pl.cdiv(R, tm) < 2:
        tm = _round_up(pl.cdiv(R, 2), 8)        # >=2 row tiles -> both v7x TCs

    if use_full_w:
        grid = (pl.cdiv(R, tm),)
        out = pl.pallas_call(
            _prenorm_linear_full_kernel,
            out_shape=jax.ShapeDtypeStruct((R, Hp), out_dtype),
            grid_spec=pltpu.PrefetchScalarGridSpec(
                num_scalar_prefetch=0,
                grid=grid,
                in_specs=[
                    pl.BlockSpec((tm, D), lambda i: (i, 0)),    # x rows
                    pl.BlockSpec((1, D), lambda i: (0, 0)),     # gamma
                    pl.BlockSpec((1, D), lambda i: (0, 0)),     # beta
                    pl.BlockSpec((D, Hp), lambda i: (0, 0)),    # full W (resident)
                    pl.BlockSpec((1, Hp), lambda i: (0, 0)),    # bias
                ],
                out_specs=pl.BlockSpec((tm, Hp), lambda i: (i, 0)),
            ),
            compiler_params=pltpu.CompilerParams(
                dimension_semantics=("parallel",),
                vmem_limit_bytes=vmem_limit),
        )(x2d, gamma2d, beta2d, w_c, bias2d)
    else:
        grid = (pl.cdiv(R, tm), Hp // tn)
        out = pl.pallas_call(
            _prenorm_linear_tiled_kernel,
            out_shape=jax.ShapeDtypeStruct((R, Hp), out_dtype),
            grid_spec=pltpu.PrefetchScalarGridSpec(
                num_scalar_prefetch=0,
                grid=grid,
                in_specs=[
                    pl.BlockSpec((tm, D), lambda i, j: (i, 0)),   # x rows
                    pl.BlockSpec((1, D), lambda i, j: (0, 0)),    # gamma
                    pl.BlockSpec((1, D), lambda i, j: (0, 0)),    # beta
                    pl.BlockSpec((D, tn), lambda i, j: (0, j)),   # W H-tile
                    pl.BlockSpec((1, tn), lambda i, j: (0, j)),   # bias H-tile
                ],
                out_specs=pl.BlockSpec((tm, tn), lambda i, j: (i, j)),
                scratch_shapes=[pltpu.VMEM((tm, D), compute_dtype)],  # LN result
            ),
            compiler_params=pltpu.CompilerParams(
                dimension_semantics=("parallel", "arbitrary"),
                vmem_limit_bytes=vmem_limit),
        )(x2d, gamma2d, beta2d, w_c, bias2d)

    if Hp != H:
        out = out[:, :H]
    return out.reshape(*lead, H)


# ------------------ standalone LayerNorm (generic-fn fallback) ---------------
def _layernorm_kernel(x_ref, g_ref, b_ref, o_ref):
    x = x_ref[...].astype(jnp.float32)
    mean = jnp.mean(x, axis=-1, keepdims=True)
    var = jnp.mean((x - mean) ** 2, axis=-1, keepdims=True)
    inv = lax.rsqrt(var + EPS)
    o_ref[...] = ((x - mean) * inv * g_ref[...] + b_ref[...]).astype(o_ref.dtype)


def layernorm(x, gamma, beta, *, tile_rows=512):
    *lead, D = x.shape
    x2d = x.reshape(-1, D)
    R = x2d.shape[0]
    gamma2d = gamma.reshape(1, D).astype(jnp.float32)
    beta2d = beta.reshape(1, D).astype(jnp.float32)

    tm = min(tile_rows, _round_up(R, 8))
    if R <= 8:
        tm = R
    elif pl.cdiv(R, tm) < 2:
        tm = _round_up(pl.cdiv(R, 2), 8)
    grid = (pl.cdiv(R, tm),)    # ragged last tile masked by Pallas (no jnp.pad)

    out = pl.pallas_call(
        _layernorm_kernel,
        out_shape=jax.ShapeDtypeStruct((R, D), x.dtype),
        grid_spec=pltpu.PrefetchScalarGridSpec(
            num_scalar_prefetch=0,
            grid=grid,
            in_specs=[
                pl.BlockSpec((tm, D), lambda i: (i, 0)),
                pl.BlockSpec((1, D), lambda i: (0, 0)),
                pl.BlockSpec((1, D), lambda i: (0, 0)),
            ],
            out_specs=pl.BlockSpec((tm, D), lambda i: (i, 0)),
        ),
        compiler_params=pltpu.CompilerParams(
            dimension_semantics=("parallel",),
            vmem_limit_bytes=_vmem_limit_bytes()),
    )(x2d, gamma2d, beta2d)
    return out.reshape(*lead, D)


def pre_norm(x, gamma, beta, fn, **kwargs):
    """Generic PreNorm.forward: fn(LayerNorm(x), **kwargs) for arbitrary fn."""
    # TODO(synk): arbitrary `fn` cannot be fused generically; only the Linear
    # case gets the fully fused kernel (pre_norm_linear).
    return fn(layernorm(x, gamma, beta), **kwargs)


# ----------------------------------- demo ------------------------------------
if __name__ == "__main__":
    B, S, DIM, HID = 2, 8, 32, 32

    key = jax.random.PRNGKey(0)
    kx, kw, kb = jax.random.split(key, 3)

    x = jax.random.normal(kx, (B, S, DIM), dtype=jnp.float32)

    # nn.LayerNorm(dim) default init.
    gamma = jnp.ones((DIM,), dtype=jnp.float32)
    beta = jnp.zeros((DIM,), dtype=jnp.float32)

    # Inner fn = Linear(dim -> hidden).
    w = jax.random.normal(kw, (DIM, HID), dtype=jnp.float32) * 0.05
    b = jax.random.normal(kb, (HID,), dtype=jnp.float32) * 0.01

    # Fused path (bf16 MXU operands, f32 accumulation).
    out = pre_norm_linear(x, gamma, beta, w, b)
    out = jax.block_until_ready(out)

    # Generic-fn fallback path (standalone LayerNorm kernel + plain JAX fn).
    out_generic = pre_norm(x, gamma, beta, lambda z: z @ w + b)
    out_generic = jax.block_until_ready(out_generic)

    # Reference in plain JAX (f32).
    mean = jnp.mean(x, axis=-1, keepdims=True)
    var = jnp.mean((x - mean) ** 2, axis=-1, keepdims=True)
    x_ln = (x - mean) * lax.rsqrt(var + EPS) * gamma + beta
    ref = jnp.einsum("bsd,dh->bsh", x_ln, w) + b

    assert out.shape == (B, S, HID)
    # Fused path uses bf16 matmul operands -> bf16-level tolerance vs f32 ref.
    assert jnp.allclose(out, ref, atol=2e-2, rtol=2e-2), \
        float(jnp.max(jnp.abs(out - ref)))
    # Generic path is end-to-end f32.
    assert jnp.allclose(out_generic, ref, atol=1e-4, rtol=1e-4)
    print("KERNEL_OK")
</pallas_src>

<mosaic_0001>
module attributes {stable_mosaic.version = 11 : i64} {
  func.func @_prenorm_linear_full_kernel(%arg0: i32, %arg1: memref<8x32xf32, #tpu.memory_space<vmem>>, %arg2: memref<1x32xf32, #tpu.memory_space<vmem>>, %arg3: memref<1x32xf32, #tpu.memory_space<vmem>>, %arg4: memref<32x128xbf16, #tpu.memory_space<vmem>>, %arg5: memref<1x128xf32, #tpu.memory_space<vmem>>, %arg6: memref<8x128xf32, #tpu.memory_space<vmem>>) attributes {dimension_semantics = [#tpu.dimension_semantics<parallel>], iteration_bounds = array<i64: 2>, scalar_prefetch = 0 : i64, scratch_operands = 0 : i64, tpu.core_type = #tpu.core_type<tc>, window_params = [{transform_indices = @transform_0, window_bounds = array<i64: 8, 32>}, {pipeline_mode = #tpu.pipeline_mode<synchronous>, transform_indices = @transform_1, window_bounds = array<i64: 1, 32>}, {pipeline_mode = #tpu.pipeline_mode<synchronous>, transform_indices = @transform_2, window_bounds = array<i64: 1, 32>}, {pipeline_mode = #tpu.pipeline_mode<synchronous>, transform_indices = @transform_3, window_bounds = array<i64: 32, 128>}, {pipeline_mode = #tpu.pipeline_mode<synchronous>, transform_indices = @transform_4, window_bounds = array<i64: 1, 128>}, {transform_indices = @transform_5, window_bounds = array<i64: 8, 128>}]} {
    %c0 = arith.constant 0 : index
    %c0_0 = arith.constant 0 : index
    %0 = vector.load %arg1[%c0, %c0_0] : memref<8x32xf32, #tpu.memory_space<vmem>>, vector<8x32xf32>
    %cst = arith.constant dense<0.000000e+00> : vector<8xf32>
    %1 = vector.multi_reduction <add>, %0, %cst [1] : vector<8x32xf32> to vector<8xf32>
    %2 = vector.shape_cast %1 : vector<8xf32> to vector<8x1xf32>
    %cst_1 = arith.constant 3.200000e+01 : f32
    %3 = vector.broadcast %cst_1 : f32 to vector<8x1xf32>
    %4 = arith.divf %2, %3 : vector<8x1xf32>
    %5 = vector.broadcast %4 : vector<8x1xf32> to vector<8x32xf32>
    %6 = arith.subf %0, %5 : vector<8x32xf32>
    %7 = arith.mulf %6, %6 : vector<8x32xf32>
    %cst_2 = arith.constant dense<0.000000e+00> : vector<8xf32>
    %8 = vector.multi_reduction <add>, %7, %cst_2 [1] : vector<8x32xf32> to vector<8xf32>
    %9 = vector.shape_cast %8 : vector<8xf32> to vector<8x1xf32>
    %cst_3 = arith.constant 3.200000e+01 : f32
    %10 = vector.broadcast %cst_3 : f32 to vector<8x1xf32>
    %11 = arith.divf %9, %10 : vector<8x1xf32>
    %cst_4 = arith.constant 9.99999974E-6 : f32
    %12 = vector.broadcast %cst_4 : f32 to vector<8x1xf32>
    %13 = arith.addf %11, %12 : vector<8x1xf32>
    %14 = math.rsqrt %13 : vector<8x1xf32>
    %15 = vector.broadcast %4 : vector<8x1xf32> to vector<8x32xf32>
    %16 = arith.subf %0, %15 : vector<8x32xf32>
    %17 = vector.broadcast %14 : vector<8x1xf32> to vector<8x32xf32>
    %18 = arith.mulf %16, %17 : vector<8x32xf32>
    %c0_5 = arith.constant 0 : index
    %c0_6 = arith.constant 0 : index
    %19 = vector.load %arg2[%c0_5, %c0_6] : memref<1x32xf32, #tpu.memory_space<vmem>>, vector<1x32xf32>
    %20 = vector.broadcast %19 : vector<1x32xf32> to vector<8x32xf32>
    %21 = arith.mulf %18, %20 : vector<8x32xf32>
    %c0_7 = arith.constant 0 : index
    %c0_8 = arith.constant 0 : index
    %22 = vector.load %arg3[%c0_7, %c0_8] : memref<1x32xf32, #tpu.memory_space<vmem>>, vector<1x32xf32>
    %23 = vector.broadcast %22 : vector<1x32xf32> to vector<8x32xf32>
    %24 = arith.addf %21, %23 : vector<8x32xf32>
    %25 = arith.truncf %24 : vector<8x32xf32> to vector<8x32xbf16>
    %c0_9 = arith.constant 0 : index
    %c0_10 = arith.constant 0 : index
    %26 = vector.load %arg4[%c0_9, %c0_10] : memref<32x128xbf16, #tpu.memory_space<vmem>>, vector<32x128xbf16>
    %cst_11 = arith.constant dense<0.000000e+00> : vector<8x128xf32>
    %27 = tpu.matmul %25, %26, %cst_11 {dimension_numbers = #tpu.dot_dimension_numbers<[1], [0], [0], [1], [0, 0, 1, 1], [], []>} : vector<8x32xbf16>, vector<32x128xbf16>, vector<8x128xf32> -> vector<8x128xf32>
    %c0_12 = arith.constant 0 : index
    %c0_13 = arith.constant 0 : index
    %28 = vector.load %arg5[%c0_12, %c0_13] : memref<1x128xf32, #tpu.memory_space<vmem>>, vector<1x128xf32>
    %29 = vector.broadcast %28 : vector<1x128xf32> to vector<8x128xf32>
    %30 = arith.addf %27, %29 : vector<8x128xf32>
    %c0_14 = arith.constant 0 : index
    %c0_15 = arith.constant 0 : index
    %31 = vector.load %arg6[%c0_14, %c0_15] : memref<8x128xf32, #tpu.memory_space<vmem>>, vector<8x128xf32>
    tpu.vector_store %arg6[%c0_14, %c0_15], %30 {strides = array<i32>} : memref<8x128xf32, #tpu.memory_space<vmem>>, vector<8x128xf32>,
    return
  }
  func.func @transform_0(%arg0: i32) -> (i32, i32) {
    %c0_i32 = arith.constant 0 : i32
    %c0_i32_0 = arith.constant 0 : i32
    return %arg0, %c0_i32 : i32, i32
  }
  func.func @transform_1(%arg0: i32) -> (i32, i32) {
    %c0_i32 = arith.constant 0 : i32
    %c0_i32_0 = arith.constant 0 : i32
    %c0_i32_1 = arith.constant 0 : i32
    return %c0_i32, %c0_i32_0 : i32, i32
  }
  func.func @transform_2(%arg0: i32) -> (i32, i32) {
    %c0_i32 = arith.constant 0 : i32
    %c0_i32_0 = arith.constant 0 : i32
    %c0_i32_1 = arith.constant 0 : i32
    return %c0_i32, %c0_i32_0 : i32, i32
  }
  func.func @transform_3(%arg0: i32) -> (i32, i32) {
    %c0_i32 = arith.constant 0 : i32
    %c0_i32_0 = arith.constant 0 : i32
    %c0_i32_1 = arith.constant 0 : i32
    return %c0_i32, %c0_i32_0 : i32, i32
  }
  func.func @transform_4(%arg0: i32) -> (i32, i32) {
    %c0_i32 = arith.constant 0 : i32
    %c0_i32_0 = arith.constant 0 : i32
    %c0_i32_1 = arith.constant 0 : i32
    return %c0_i32, %c0_i32_0 : i32, i32
  }
  func.func @transform_5(%arg0: i32) -> (i32, i32) {
    %c0_i32 = arith.constant 0 : i32
    %c0_i32_0 = arith.constant 0 : i32
    return %arg0, %c0_i32 : i32, i32
  }
}

</mosaic_0001>

<bundles_post_ra>
// kernel: tpu_custom_call.1
= control target key start
LH: loop header
LB: loop body
LE: loop exit
PB: predicated region body
PF: predicated region fallthrough
CT: control target
= control target key end

     0   :  { %10 = vsyncpa [#allocation3], 0  ;;  %s913_s0 = inlined_call_operand.hbm [shape: f32[16,32], index: 0, kind: input, shape index: {}]   ;;  %s914_s1 = inlined_call_operand.hbm [shape: f32[1,32], index: 1, kind: input, shape index: {}]   ;;  %s915_s2 = inlined_call_operand.vmem [shape: f32[1,32], index: 2, kind: input, shape index: {}]   ;;  %s916_s3 = inlined_call_operand.hbm [shape: bf16[32,128], index: 3, kind: input, shape index: {}]   ;;  %s917_s4 = inlined_call_operand.vmem [shape: f32[1,128], index: 4, kind: input, shape index: {}]   ;;  %s918_s5 = inlined_call_operand.hbm [shape: f32[16,128], index: 5, kind: output, shape index: {}]  }
   0x1   :  { %12 = vsyncpa [#allocation3 + $0x1], 0 }
   0x2   :  { %13 = vsyncpa [#allocation6], 0 }
   0x3   :  { %14 = vsyncpa [#allocation4], 0 }
   0x4   :  { %16 = vsyncpa [#allocation4 + $0x1], 0  ;;  %s759_s18 = smov 0   ;;  %s761_s19 = smov 0  }
   0x5   :  { %s763_s20 = smov 0   ;;  %s765_s21 = smov 0  }
   0x6 LB: > { %s780_s22 = sadd.s32 4294967295, %s722_s21   ;;  %s458_s23 = sadd.s32 4294967294, %s722_s21   ;;  %s722_s21 = sphi %s765_s21, %s928_s21   ;;  %s718_s20 = sphi %s763_s20, %s927_s20   ;;  %s714_s19 = sphi %s761_s19, %s926_s19   ;;  %s710_s18 = sphi %s759_s18, %s925_s18  }
   0x7   : > { %p42_p0 = scmp.ne.s32.totalorder %s714_s19, %s710_s18  ;;  %p43_p1 = scmp.eq.s32.totalorder %s780_s22, 0 }
   0x8   : > { %p150_p2 = scmp.eq.s32.totalorder %s780_s22, 1  ;;  %p156_p3 = scmp.eq.s32.totalorder %s458_s23, 1 }
   0x9   : > { %p789_p4 = por %p43_p1, %p42_p0  ;;  %p459_p5 = scmp.ge.s32.totalorder %s722_s21, 1 }
   0xa   : > { %p794_p6 = por %p156_p3, %p42_p0  ;;  %p163_p7 = scmp.lt.s32.totalorder %s722_s21, 3 }
   0xb   : > { %s175_s28 = sshll.u32 %s914_s1, 4  ;;  %s724_s30 = smov [#allocation5]   ;;  %s176_s28 = int_to_ptr.hbm [resolvable:$true] %s175_s28 }
   0xc   : > { %p802_p8 = pnand %p459_p5, %p163_p7  ;;  %s177_s6 = sshll.u32 %s724_s30, 4  ;;  %s178_s6 = int_to_ptr.vmem [resolvable:$true] %s177_s6 }
   0xd   : > { %s189_s9 = sshll.u32 %s916_s3, 4  ;;  %s725_s10 = smov [#allocation7]   ;;  %s190_s9 = int_to_ptr.hbm [resolvable:$true] %s189_s9 }
   0xe   : > { %p497_p10 = pneg %p802_p8  ;;  %s191_s11 = sshll.u32 %s725_s10, 4  ;;  %s192_s11 = int_to_ptr.vmem [resolvable:$true] %s191_s11 }
   0xf   : > { %s726_s12 = smov 64   ;;  %s727_s13 = smov 4  }
  0x10   : > { %p498_p11 = pnand %p497_p10, %p43_p1  ;;  %s815_s14 = sadd.s32 1, %s722_s21  }
  0x11   : > { %s26_s15 = ssub.s32 %s722_s21, %s815_s14  ;;  %s29_s16 = sadd.s32 1, %s718_s20 }
  0x12   : > { %500 = dma.hbm_to_vmem [thread:$0]  (!%p498_p11), %s176_s28, 16, %s178_s6, [#allocation6]  }
  0x13   : > { %503 = dma.hbm_to_vmem [thread:$0]  (!%p498_p11), %s190_s9, 256, %s192_s11, [#allocation6], %s726_s12, %s726_s12, %s727_s13  }
  0x14   : > { %p27_p12 = scmp.eq.s32.totalorder %s26_s15, 0  ;;  %p36_p13 = scmp.ne.s32.totalorder %s718_s20, %s714_s19 }
  0x15   : > { %p37_p0 = scmp.eq.s32.totalorder %s722_s21, 0  ;;  %p514_p7 = scmp.lt.s32.totalorder %s722_s21, 2 }
  0x16   : > { %s824_s17 = scalar_select %p27_p12, %s718_s20, %s29_s16  }
  0x17   : > { %p38_p3 = por %p37_p0, %p36_p13  ;;  %p828_p5 = por %p150_p2, %p36_p13 }
  0x18   : > { %s208_s26 = sand.u32 1, %s718_s20   ;;  %s464_s28 = sshll.u32 %s722_s21, 3 }
  0x19   : > { %s463_s27 = sshll.u32 %s208_s26, 3  ;;  %s216_s7 = scalar_lea.hbm %s913_s0, %s464_s28 }
  0x1a   : > { %s212_s8 = scalar_lea.vmem [#allocation2], %s463_s27  ;;  %s218_s10 = sshll.u32 %s216_s7, 4  ;;  %s219_s10 = int_to_ptr.hbm [resolvable:$true] %s218_s10 }
  0x1b   : > { %s220_s9 = sshll.u32 %s212_s8, 4  ;;  %p838_p10 = pnand %p514_p7, %p38_p3  ;;  %s221_s9 = int_to_ptr.vmem [resolvable:$true] %s220_s9 }
  0x1c   : > { %s209_s12 = scalar_lea.sflag [#allocation3], %s208_s26  ;;  %s622_s13 = sshra.s32 %s219_s10, 4  ;;  %s623_s13 = int_to_ptr.hbm [resolvable:$true] %s622_s13 }
  0x1d   : > { %s624_s15 = scalar_lea.hbm %s623_s13, 8  ;;  %p626_p11 = pneg %p838_p10 }
  0x1e   : > { %p625_p2 = scmp.ne.s32.totalorder %s623_s13, %s624_s15  ;;  %s629_s28 = scalar_lea.hbm %s913_s0, 16 }
  0x1f   : > { %p630_p0 = scmp.lt.s32.totalorder %s623_s13, %s913_s0  ;;  %p631_p3 = scmp.lt.s32.totalorder %s629_s28, %s624_s15 }
  0x20   : > { %p627_p12 = pnand %p626_p11, %p625_p2 }
  0x21   : > { %p632_p7 = por %p631_p3, %p630_p0 }
  0x22   : > { %p628_p13 = pneg %p627_p12 }
  0x24   : > { %p633_p9 = pnand %p632_p7, %p628_p13 }
  0x26   : > { %636 = shalt.err (!%p633_p9)
}
  0x27   : > { %507 = dma.hbm_to_vmem [thread:$0]  (!%p838_p10), %s219_s10, 128, %s221_s9, %s209_s12  }
  0x28   : > { %229 = sbr.rel (%p802_p8) target bundleno = 453 (0x1c5), region = 40  ;;  %s855_s26 = sand.u32 (!%p802_p8), 1, %s714_s19  }
  0x29   : > { %s466_s7 = sshll.u32 (!%p802_p8), %s855_s26, 3  ;;  %s232_s8 = scalar_lea.sflag (!%p802_p8), [#allocation3], %s855_s26 }
  0x2a   : > { %s235_s13 = scalar_lea.vmem (!%p802_p8), [#allocation2], %s466_s7 }
  0x2d   : > { %697 = dma.done.wait (%p789_p4), %s232_s8, 128  }
  0x2e   : > { %699 = vsyncadd (%p789_p4), %s232_s8, 4294967168 }
  0x2f   : > { %701 = dma.done.wait (%p43_p1), [#allocation6], 272  }
  0x30   : > { %703 = vsyncadd (%p43_p1), [#allocation6], 4294967024  ;;  %vm275_vm0 = vcmask 261120   ;;  %v274_v0 = vld [vmem:[%s235_s13] sm:$0xff]  ;;  %v728_v2 = vmov 32.0   ;;  %v483_v15 = vld [vmem:[#allocation7] sm:$0xff] }
  0x31   : > { %v276_v1 = vsel %vm275_vm0, %v274_v0, 0.0  ;;  %558 = vrcp.f32 %v728_v2  ;;  %v484_v14 = vld [vmem:[#allocation7 + $0x8] sm:$0xff]  ;;  %v555_v25 = vld [vmem:[#allocation5] ss:$0 sm:$0xff]  ;;  %s480_s9 = sshll.u32 %s780_s22, 3  ;;  %s272_s27 = scalar_lea.vmem [#allocation8], %s466_s7 }
  0x32   : > { %277 = vadd.xlane.f32.xlu0 %v276_v1  ;;  %345 = vmatpush.bf16.msra.mxu0 %v484_v14  ;;  %v556_v28 = vld [vmem:[%s915_s2] ss:$0 sm:$0xff]  ;;  %s364_s12 = scalar_lea.hbm %s918_s5, %s480_s9  ;;  %s366_s28 = sshll.u32 %s272_s27, 4  ;;  %s367_s28 = int_to_ptr.vmem [resolvable:$true] %s366_s28 }
  0x33   : > { %v557_v32 = vld [vmem:[%s917_s4] ss:$0 sm:$0xff]  ;;  %s368_s30 = sshll.u32 %s364_s12, 4  ;;  %s354_s6 = scalar_lea.sflag [#allocation4], %s855_s26  ;;  %s369_s30 = int_to_ptr.hbm [resolvable:$true] %s368_s30 }
  0x34   : > { %s666_s22 = sshra.s32 %s369_s30, 4  ;;  %s672_s29 = scalar_lea.hbm %s918_s5, 16  ;;  %s667_s22 = int_to_ptr.hbm [resolvable:$true] %s666_s22 }
  0x35   : > { %s668_s8 = scalar_lea.hbm %s667_s22, 8  ;;  %p673_p9 = scmp.lt.s32.totalorder %s667_s22, %s918_s5 }
  0x36   : > { %346 = vmatpush.bf16.msra.mxu0 %v483_v15  ;;  %p669_p1 = scmp.ne.s32.totalorder %s667_s22, %s668_s8  ;;  %p674_p10 = scmp.lt.s32.totalorder %s672_s29, %s668_s8 }
  0x37   : > { %v559_v3 = vpop.eup %558 }
  0x38   : > { %v280_v4 = vmul.f32 32.0, %v559_v3  ;;  %vm284_vm1 = vweird.f32 %v559_v3  ;;  %p670_p4 = pnand %p669_p1, %p828_p5  ;;  %p675_p2 = por %p674_p10, %p673_p9 }
  0x3a   : > { %v281_v5 = vsub.f32 1.0, %v280_v4  ;;  %p671_p8 = pneg %p670_p4 }
  0x3c   : > { %v282_v6 = vmul.f32 %v559_v3, %v281_v5  ;;  %p676_p11 = pnand %p675_p2, %p671_p8 }
  0x3e   : > { %v283_v7 = vadd.f32 %v559_v3, %v282_v6 }
  0x40   : > { %v285_v8 = vsel %vm284_vm1, %v559_v3, %v283_v7 }
  0xa5   : > { %v278_v9 = vpop.xlane.xlu0 %277 }
  0xa6   : > { %v286_v10 = vmul.f32 %v285_v8, %v278_v9 }
  0xa8   : > { %v287_v11 = vsub.f32 %v274_v0, %v286_v10 }
  0xaa   : > { %v288_v12 = vmul.f32 %v287_v11, %v287_v11 }
  0xac   : > { %v289_v13 = vsel %vm275_vm0, %v288_v12, 0.0 }
  0xad   : > { %290 = vadd.xlane.f32.xlu0 %v289_v13 }
 0x120   : > { %v291_v16 = vpop.xlane.xlu0 %290 }
 0x121   : > { %v292_v17 = vmul.f32 %v291_v16, %v285_v8 }
 0x123   : > { %v293_v18 = vadd.f32 1e-05, %v292_v17 }
 0x125   : > { %560 = vrsqrt.f32 %v293_v18  ;;  %vm300_vm3 = vweird.f32 %v293_v18 }
 0x12b   : > { %v561_v19 = vpop.eup %560 }
 0x12c   : > { %v295_v20 = vmul.f32 %v561_v19, %v293_v18  ;;  %vm301_vm2 = vweird.f32 %v561_v19 }
 0x12d   : > { %vm302_vm4 = vmor %vm300_vm3, %vm301_vm2 }
 0x12e   : > { %v296_v21 = vmul.f32 %v561_v19, %v295_v20 }
 0x130   : > { %v297_v22 = vmul.f32 0.5, %v296_v21 }
 0x132   : > { %v298_v23 = vsub.f32 1.5, %v297_v22 }
 0x134   : > { %v299_v24 = vmul.f32 %v561_v19, %v298_v23 }
 0x136   : > { %v303_v26 = vsel %vm302_vm4, %v561_v19, %v299_v24 }
 0x137   : > { %v304_v27 = vmul.f32 %v303_v26, %v287_v11 }
 0x139   : > { %v309_v29 = vmul.f32 %v555_v25, %v304_v27 }
 0x13b   : > { %v314_v30 = vadd.f32 %v556_v28, %v309_v29 }
 0x13d   : > { %v315_v31 = vpack.c.bf16 %v314_v30, %v314_v30 }
 0x13f   : > { %478 = vmatmul.msk.bf16.vlgmr.msra.gmra.mxu0 %vm275_vm0, %v315_v31 }
 0x1bc   : > { %v348_v33 = vpop.f32.mrf.mxu0 }
 0x1bd   : > { %v349_v34 = vadd.f32 %v557_v32, %v348_v33 }
 0x1bf   : > { %352 = vst [vmem:[%s272_s27] sm:$0xff] %v349_v34 }
 0x1c0   : > { %679 = shalt.err (!%p676_p11)
}
 0x1c1   : > { %495 = dma.vmem_to_hbm [thread:$0]  (%p828_p5), %s367_s28, 128, %s369_s30, %s354_s6  }
 0x1c4   : > { %v350_v35 = vpop.f32.mrf.mxu0 }
 0x1c5 PF: > { %s380_s26 = sand.u32 1, %s710_s18   ;;  %p924_p12 = scmp.ge.s32.totalorder %s722_s21, 2 }
 0x1c6   : > { %s381_s10 = scalar_lea.sflag [#allocation4], %s380_s26 }
 0x1c7   : > { %p509_p13 = pnand %p924_p12, %p794_p6 }
 0x1c9   : > { %p510_p0 = pneg %p509_p13 }
 0x1cb   : > { %705 = dma.done.wait (%p510_p0), %s381_s10, 128  }
 0x1cc   : > { %707 = vsyncadd (%p510_p0), %s381_s10, 4294967168  ;;  %p19_p3 = scmp.ge.s32.totalorder %s815_s14, 4   ;;  %s925_s18 = smov %s714_s19 }
 0x1cd   : > { %s926_s19 = smov %s718_s20  ;;  %s927_s20 = smov %s824_s17 }
 0x1ce   : > { %s928_s21 = smov %s815_s14  ;;  %21 = sbr.rel (!%p19_p3) target bundleno = 6 (0x6), region = 93 }
 0x1d3   :  { %387 = vsyncpa [#allocation3], 1 }
 0x1d4   :  { %389 = vsyncpa [#allocation3 + $0x1], 1 }
 0x1d5   :  { %390 = vsyncpa [#allocation6], 1 }
 0x1d6   :  { %391 = vsyncpa [#allocation4], 1 }
 0x1d7   :  { %393 = vsyncpa [#allocation4 + $0x1], 1 }

</bundles_post_ra>
